<compile_context>
chip_gen: v6e
topology: v6e:2x2x1
jax: 0.10.0
libtpu: 0.0.40
codegen_flags: <defaults>
</compile_context>

<pallas_src>
import functools

import jax
import jax.numpy as jnp
from jax.experimental import pallas as pl
from jax.experimental.pallas import tpu as pltpu


def _round_up(v, m):
    return ((v + m - 1) // m) * m


def _ls_ce_kernel(x_ref, t_ref, out_ref, *, smoothing, n_true, mask_last):
    i = pl.program_id(0)
    x = x_ref[...].astype(jnp.float32)            # (TN, C) f32 internals
    t = t_ref[...]                                # (TN, 1) int32
    tn, c = x.shape
    confidence = 1.0 - smoothing

    # Numerically stable shifted logits + logsumexp along the class (lane) axis.
    m = jnp.max(x, axis=-1, keepdims=True)        # (TN, 1)
    shifted = x - m
    lse = jnp.log(jnp.sum(jnp.exp(shifted), axis=-1, keepdims=True))  # (TN, 1)

    # Fused nll + smooth reduction, algebraically split (no (TN, C) weight temp):
    #   loss_row = confidence*nll + smoothing*smooth
    #            = lse - confidence*shifted[target] - (smoothing/C)*sum(shifted)
    col = jax.lax.broadcasted_iota(jnp.int32, (tn, c), 1)
    tgt_shift = jnp.sum(jnp.where(col == t, shifted, 0.0), axis=-1, keepdims=True)
    sum_shift = jnp.sum(shifted, axis=-1, keepdims=True)
    loss_row = lse - confidence * tgt_shift - (smoothing / c) * sum_shift  # (TN, 1)

    if mask_last:
        # Only the boundary tile pays for the row mask; padding rows (undefined
        # data, possibly NaN) contribute exactly 0 (where() does not propagate
        # NaN from the unselected branch).
        last = pl.num_programs(0) - 1

        @pl.when(i == last)
        def _():
            row = jax.lax.broadcasted_iota(jnp.int32, (tn, 1), 0) + i * tn
            out_ref[0, 0] = jnp.sum(jnp.where(row < n_true, loss_row, 0.0))

        @pl.when(i != last)
        def _():
            out_ref[0, 0] = jnp.sum(loss_row)
    else:
        out_ref[0, 0] = jnp.sum(loss_row)


def label_smoothing_cross_entropy(x, target, smoothing=0.1, block_n=None):
    """x: (N, C) float logits, target: (N,) int labels -> scalar f32 loss."""
    n, c = x.shape
    itemsize = jnp.dtype(x.dtype).itemsize
    # Sublane packing: 8 rows for 32-bit, 16 for bf16, 32 for int8/fp8.
    row_align = 8 * max(1, 4 // itemsize)

    if block_n is None:
        # Size the block so the f32 intermediates are ~4 MiB: with double-buffered
        # inputs plus ~4 block-sized f32 temps this stays well under the 48 MiB
        # vmem limit below (and under v7x's 64 MiB physical VMEM) while staying
        # near the HBM roofline on all generations.
        f32_block_bytes = 4 * 1024 * 1024
        rows = max(row_align, f32_block_bytes // (4 * max(c, 1)))
        block_n = max(row_align, min(2048, (rows // row_align) * row_align))
        # Don't tile wider than the (alignment-rounded) batch itself.
        block_n = min(block_n, _round_up(n, row_align))
        # Keep >=2 tiles when possible so the "parallel" batch axis can shard
        # across both TensorCores on v7x (no-op on v5e/v6e).
        if pl.cdiv(n, block_n) == 1 and n > 2 * row_align:
            block_n = max(row_align, _round_up((n + 1) // 2, row_align))

    num_tiles = pl.cdiv(n, block_n)
    mask_last = (n % block_n) != 0

    # No jnp.pad of x: Pallas handles the boundary block; only the tiny target
    # vector is reshaped to 2D.
    t2d = target.astype(jnp.int32).reshape(n, 1)

    kernel = functools.partial(
        _ls_ce_kernel,
        smoothing=float(smoothing),
        n_true=n,
        mask_last=mask_last,
    )

    partials = pl.pallas_call(
        kernel,
        out_shape=jax.ShapeDtypeStruct((num_tiles, 1), jnp.float32),
        grid=(num_tiles,),
        in_specs=[
            pl.BlockSpec((block_n, c), lambda i: (i, 0)),
            pl.BlockSpec((block_n, 1), lambda i: (i, 0)),
        ],
        out_specs=pl.BlockSpec(
            (1, 1), lambda i: (i, 0), memory_space=pltpu.MemorySpace.SMEM
        ),
        compiler_params=pltpu.CompilerParams(
            dimension_semantics=("parallel",),
            vmem_limit_bytes=48 * 1024 * 1024,
        ),
    )(x, t2d)

    # Tiny final reduction over the per-tile partial sums.
    return jnp.sum(partials) / jnp.float32(n)


if __name__ == "__main__":
    key = jax.random.PRNGKey(0)
    kx, kt = jax.random.split(key)
    N, C = 8, 32                                  # small demo: batch=8, classes=32
    x = jax.random.normal(kx, (N, C), dtype=jnp.float32)
    target = jax.random.randint(kt, (N,), 0, C, dtype=jnp.int32)

    loss = label_smoothing_cross_entropy(x, target, smoothing=0.1)
    jax.block_until_ready(loss)

    # Pure-JAX reference (same math as the PyTorch module).
    logprobs = jax.nn.log_softmax(x, axis=-1)
    nll = -jnp.take_along_axis(logprobs, target[:, None], axis=-1)[:, 0]
    smooth = -jnp.mean(logprobs, axis=-1)
    ref = jnp.mean(0.9 * nll + 0.1 * smooth)
    assert jnp.allclose(loss, ref, atol=1e-5), (loss, ref)

    # Also exercise a non-divisible N to check the boundary-tile masking path
    # (no wrapper-side padding anymore).
    N2 = 13
    x2 = jax.random.normal(kx, (N2, C), dtype=jnp.float32)
    t2 = jax.random.randint(kt, (N2,), 0, C, dtype=jnp.int32)
    loss2 = label_smoothing_cross_entropy(x2, t2, smoothing=0.1)
    jax.block_until_ready(loss2)
    lp2 = jax.nn.log_softmax(x2, axis=-1)
    nll2 = -jnp.take_along_axis(lp2, t2[:, None], axis=-1)[:, 0]
    ref2 = jnp.mean(0.9 * nll2 + 0.1 * (-jnp.mean(lp2, axis=-1)))
    assert jnp.allclose(loss2, ref2, atol=1e-5), (loss2, ref2)

    print("KERNEL_OK")
</pallas_src>

<mosaic_0001>
module attributes {stable_mosaic.version = 11 : i64} {
  func.func @_ls_ce_kernel(%arg0: i32, %arg1: memref<8x32xf32, #tpu.memory_space<vmem>>, %arg2: memref<8x1xi32, #tpu.memory_space<vmem>>, %arg3: memref<1x1xf32, #tpu.memory_space<smem>>) attributes {dimension_semantics = [#tpu.dimension_semantics<parallel>], iteration_bounds = array<i64: 1>, scalar_prefetch = 0 : i64, scratch_operands = 0 : i64, tpu.core_type = #tpu.core_type<tc>, window_params = [{transform_indices = @transform_0, window_bounds = array<i64: 8, 32>}, {transform_indices = @transform_1, window_bounds = array<i64: 8, 1>}, {transform_indices = @transform_2, window_bounds = array<i64: 1, 1>}]} {
    %c0 = arith.constant 0 : index
    %c0_0 = arith.constant 0 : index
    %0 = vector.load %arg1[%c0, %c0_0] : memref<8x32xf32, #tpu.memory_space<vmem>>, vector<8x32xf32>
    %c0_1 = arith.constant 0 : index
    %c0_2 = arith.constant 0 : index
    %1 = vector.load %arg2[%c0_1, %c0_2] : memref<8x1xi32, #tpu.memory_space<vmem>>, vector<8x1xi32>
    %cst = arith.constant dense<0xFF800000> : vector<8xf32>
    %2 = vector.multi_reduction <maximumf>, %0, %cst [1] : vector<8x32xf32> to vector<8xf32>
    %3 = vector.shape_cast %2 : vector<8xf32> to vector<8x1xf32>
    %4 = vector.broadcast %3 : vector<8x1xf32> to vector<8x32xf32>
    %5 = arith.subf %0, %4 : vector<8x32xf32>
    %6 = math.exp %5 : vector<8x32xf32>
    %cst_3 = arith.constant dense<0.000000e+00> : vector<8xf32>
    %7 = vector.multi_reduction <add>, %6, %cst_3 [1] : vector<8x32xf32> to vector<8xf32>
    %8 = vector.shape_cast %7 : vector<8xf32> to vector<8x1xf32>
    %9 = math.log %8 : vector<8x1xf32>
    %10 = tpu.iota {dimensions = array<i32: 1>} : vector<8x32xi32>
    %11 = vector.broadcast %1 : vector<8x1xi32> to vector<8x32xi32>
    %12 = arith.cmpi eq, %10, %11 : vector<8x32xi32>
    %cst_4 = arith.constant 0.000000e+00 : f32
    %13 = vector.broadcast %cst_4 : f32 to vector<8x32xf32>
    %14 = arith.select %12, %5, %13 : vector<8x32xi1>, vector<8x32xf32>
    %cst_5 = arith.constant dense<0.000000e+00> : vector<8xf32>
    %15 = vector.multi_reduction <add>, %14, %cst_5 [1] : vector<8x32xf32> to vector<8xf32>
    %16 = vector.shape_cast %15 : vector<8xf32> to vector<8x1xf32>
    %cst_6 = arith.constant dense<0.000000e+00> : vector<8xf32>
    %17 = vector.multi_reduction <add>, %5, %cst_6 [1] : vector<8x32xf32> to vector<8xf32>
    %18 = vector.shape_cast %17 : vector<8xf32> to vector<8x1xf32>
    %cst_7 = arith.constant 0.899999976 : f32
    %19 = vector.broadcast %cst_7 : f32 to vector<8x1xf32>
    %20 = arith.mulf %19, %16 : vector<8x1xf32>
    %21 = arith.subf %9, %20 : vector<8x1xf32>
    %cst_8 = arith.constant 3.125000e-03 : f32
    %22 = vector.broadcast %cst_8 : f32 to vector<8x1xf32>
    %23 = arith.mulf %22, %18 : vector<8x1xf32>
    %24 = arith.subf %21, %23 : vector<8x1xf32>
    %25 = vector.shape_cast %24 : vector<8x1xf32> to vector<1x8x1xf32>
    %cst_9 = arith.constant dense<0.000000e+00> : vector<1xf32>
    %26 = vector.multi_reduction <add>, %25, %cst_9 [1, 2] : vector<1x8x1xf32> to vector<1xf32>
    %27 = vector.shape_cast %26 : vector<1xf32> to vector<1x1x1xf32>
    %28 = vector.extract %27[0, 0, 0] : f32 from vector<1x1x1xf32>
    %c0_10 = arith.constant 0 : index
    %c0_11 = arith.constant 0 : index
    %29 = memref.load %arg3[%c0_10, %c0_11] : memref<1x1xf32, #tpu.memory_space<smem>>
    memref.store %28, %arg3[%c0_10, %c0_11] : memref<1x1xf32, #tpu.memory_space<smem>>
    return
  }
  func.func @transform_0(%arg0: i32) -> (i32, i32) {
    %c0_i32 = arith.constant 0 : i32
    %c0_i32_0 = arith.constant 0 : i32
    return %arg0, %c0_i32 : i32, i32
  }
  func.func @transform_1(%arg0: i32) -> (i32, i32) {
    %c0_i32 = arith.constant 0 : i32
    %c0_i32_0 = arith.constant 0 : i32
    return %arg0, %c0_i32 : i32, i32
  }
  func.func @transform_2(%arg0: i32) -> (i32, i32) {
    %c0_i32 = arith.constant 0 : i32
    %c0_i32_0 = arith.constant 0 : i32
    return %arg0, %c0_i32 : i32, i32
  }
}

</mosaic_0001>

<bundles_post_ra>
// kernel: tpu_custom_call.1
= control target key start
LH: loop header
LB: loop body
LE: loop exit
PB: predicated region body
PF: predicated region fallthrough
CT: control target
= control target key end

     0   :  { %vm14_vm0 = vcmask 261120   ;;  %s118_s0 = inlined_call_operand.vmem [shape: f32[8,32], index: 0, kind: input, shape index: {}]   ;;  %s119_s1 = inlined_call_operand.vmem [shape: s32[8,1], index: 1, kind: input, shape index: {}]   ;;  %s120_s2 = inlined_call_operand.hbm [shape: f32[1,1], index: 2, kind: output, shape index: {}]  }
   0x1   :  { %v12_v0 = vld [vmem:[%s118_s0] sm:$0xff] }
   0x2   :  { %7 = vsyncpa [#allocation3], 0  ;;  %v15_v1 = vsel %vm14_vm0, %v12_v0, -inf  ;;  %v88_v2 = vmov 0   ;;  %v13_v3 = vld [vmem:[%s119_s1] sm:$0xff]  ;;  %v26_v7 = vlaneseq  ;;  %vm43_vm2 = vcmask 7168  }
   0x3   :  { %73 = vset.pattern.permute.xlu0 %v88_v2  ;;  %s89_s1 = smov [#allocation2]  }
   0x4   :  { %16 = vmax.xlane.f32.xlu0 %v15_v1  ;;  %v27_v8 = vand.u32 127, %v26_v7 }
  0x1a   :  { %29 = vperm.xlu0 %73, %v13_v3  }
  0x8d   :  { %v17_v4 = vpop.xlane.xlu0 %16 }
  0x8e   :  { %v18_v5 = vsub.f32 %v12_v0, %v17_v4 }
  0x90   :  { %v19_v6 = vmul.f32 1.442695, %v18_v5  ;;  %v36_v14 = vsel %vm14_vm0, %v18_v5, 0.0 }
  0x92   :  { %74 = vpow2.f32 %v19_v6 }
  0x95   :  { %v30_v9 = vpop.permute.xlu0 %29 }
  0x96   :  { %vm31_vm1 = vcmp.eq.s32.totalorder %v27_v8, %v30_v9 }
  0x97   :  { %v32_v12 = vsel %vm31_vm1, %v18_v5, 0.0 }
  0x98   :  { %v33_v13 = vsel %vm14_vm0, %v32_v12, 0.0 }
  0x9f   :  { %v75_v10 = vpop.eup %74 }
  0xa0   :  { %v21_v11 = vsel %vm14_vm0, %v75_v10, 0.0 }
  0xa1   :  { %22 = vadd.xlane.f32.xlu1 %v21_v11 }
  0xa5   :  { %34 = vadd.xlane.f32.xlu1 %v33_v13 }
  0xa9   :  { %37 = vadd.xlane.f32.xlu1 %v36_v14 }
 0x12a   :  { %v23_v15 = vpop.xlane.xlu1 %22 }
 0x12b   :  { %76 = vlog2.f32 %v23_v15 }
 0x12e   :  { %v35_v16 = vpop.xlane.xlu1 %34 }
 0x12f   :  { %v39_v20 = vmul.f32 0.9, %v35_v16 }
 0x132   :  { %v38_v18 = vpop.xlane.xlu1 %37 }
 0x133   :  { %v41_v22 = vmul.f32 0.003125, %v38_v18 }
 0x138   :  { %v77_v17 = vpop.eup %76 }
 0x139   :  { %v25_v19 = vmul.f32 0.6931472, %v77_v17 }
 0x13b   :  { %v40_v21 = vsub.f32 %v25_v19, %v39_v20 }
 0x13d   :  { %v42_v23 = vsub.f32 %v40_v21, %v41_v22 }
 0x13f   :  { %v44_v24 = vsel %vm43_vm2, %v42_v23, 0.0 }
 0x140   :  { %45 = vadd.xlane.f32.xlu1 %v44_v24 }
 0x1c9   :  { %v46_v25 = vpop.xlane.xlu1 %45 }
 0x1ca   :  { %v47_v26 = vrot.slane %v46_v25, 4 }
 0x1cc   :  { %v48_v27 = vadd.f32 %v47_v26, %v46_v25 }
 0x1ce   :  { %v49_v28 = vrot.slane %v48_v27, 2 }
 0x1d0   :  { %v50_v29 = vadd.f32 %v49_v28, %v48_v27 }
 0x1d2   :  { %v51_v30 = vrot.slane %v50_v29, 1 }
 0x1d4   :  { %v52_v31 = vadd.f32 %v51_v30, %v50_v29 }
 0x1d6   :  { %69 = vpush %v52_v31 }
 0x207   :  { %s70_s0 = spop %69 }
 0x208   :  { %55 = sst [smem:[#allocation2]] %s70_s0 }
 0x209   :  { %63 = dma.smem_to_hbm %s89_s1, 16, %s120_s2, [#allocation3]  }
 0x20a   :  { %86 = dma.done.wait [#allocation3], 16  }
 0x20b   :  { %87 = vsyncadd [#allocation3], 4294967280 }
 0x20c   :  { %67 = sfence }
 0x20d   :  { %68 = vsyncpa [#allocation3], 1 }

</bundles_post_ra>
